<compile_context>
chip_gen: v7x
topology: tpu7x:2x2x1
jax: 0.10.0
libtpu: 0.0.40
codegen_flags: <defaults>
</compile_context>

<pallas_src>
import math
from functools import partial

import numpy as np
import jax
import jax.numpy as jnp
from jax.experimental import pallas as pl
from jax.experimental.pallas import tpu as pltpu


# ---------------------------------------------------------------------------
# Kernel: one plane batch x one H_out tile per grid step.
# ---------------------------------------------------------------------------
def _bilinear_kernel(img_ref, wy_ref, wxt_ref, out_ref, tmp_ref):
    b, h_in, w_in = img_ref.shape
    w_out = wxt_ref.shape[1]

    # ---- W pass (only at the first H_out tile of each plane batch): one big
    # flattened matmul.  The image arrives in its native dtype; cast here.
    @pl.when(pl.program_id(1) == 0)
    def _():
        # Reshape before the cast; zero-copy when h_in is a multiple of the
        # f32 sublane pack (8) -- true for typical image sizes.
        img = img_ref[...].reshape(b * h_in, w_in).astype(jnp.bfloat16)
        tmp = jnp.dot(img, wxt_ref[...],
                      preferred_element_type=jnp.float32)       # (B*Hin, Wout) f32
        tmp_ref[...] = tmp.astype(jnp.bfloat16)

    # ---- H pass: B plain 2-D MXU matmuls against the (t_hout, Hin) Wy tile.
    # No jnp.broadcast_to of Wy: only the weight tile plus one (t_hout, Wout)
    # f32 result are live at a time.
    wy = wy_ref[...]                                            # (t_hout, Hin) bf16
    for i in range(b):                                          # static unroll
        plane = tmp_ref[pl.ds(i * h_in, h_in), :]               # (Hin, Wout) bf16
        res = jnp.dot(wy, plane, preferred_element_type=jnp.float32)
        out_ref[i, :, :] = res.astype(out_ref.dtype)


# ---------------------------------------------------------------------------
# Interpolation matrices (torch bilinear, align_corners=False).
# ---------------------------------------------------------------------------
def _interp_matrix(out_size, in_size, scale):
    """(out_size, in_size) row-interpolation matrix; `scale` may be traced."""
    dst = jnp.arange(out_size, dtype=jnp.float32)
    src = jnp.maximum((dst + 0.5) / scale - 0.5, 0.0)
    i0 = jnp.minimum(jnp.floor(src).astype(jnp.int32), in_size - 1)
    i1 = jnp.minimum(i0 + 1, in_size - 1)
    frac = jnp.clip(src - i0.astype(jnp.float32), 0.0, 1.0)
    w = (jax.nn.one_hot(i0, in_size, dtype=jnp.float32) * (1.0 - frac)[:, None]
         + jax.nn.one_hot(i1, in_size, dtype=jnp.float32) * frac[:, None])
    return w                                                    # rows sum to 1


# ---------------------------------------------------------------------------
# Hardware-aware tile selection.
# ---------------------------------------------------------------------------
def _vmem_capacity_bytes():
    """Physical VMEM per TensorCore; runtime query with device_kind fallback."""
    try:
        cap = getattr(pltpu.get_tpu_info(), "vmem_capacity_bytes", None)
        if cap:
            return int(cap)
    except Exception:
        pass
    try:
        kind = jax.devices()[0].device_kind.lower()
    except Exception:
        return 64 * 1024 * 1024
    if "v7" in kind:
        return 64 * 1024 * 1024     # v7x: 64 MiB per TC
    return 128 * 1024 * 1024        # v5e / v6e / v5p / v4


def _num_tensorcores():
    """TensorCores a single Pallas grid can shard 'parallel' axes across."""
    try:
        kind = jax.devices()[0].device_kind.lower()
    except Exception:
        return 1
    if "v7" in kind or "v4" in kind or "v5p" in kind:
        return 2                    # dual-TC / megacore parts
    return 1                        # v5e / v6e: single TensorCore


_HOUT_TILE_CAP = 512                # rows per H_out tile for large images (mult. of 8)


def _choose_tiles(p, h_in, w_in, h_out, w_out, in_isize, out_isize):
    """Pick (block_planes, t_hout, vmem_limit_bytes) with corrected VMEM math."""
    vmem_cap = _vmem_capacity_bytes()
    n_cores = _num_tensorcores()
    vmem_limit = int(vmem_cap * 0.75)       # scoped limit requested from Mosaic
    budget = int(vmem_limit * 0.8)          # headroom for compiler temporaries

    def usage(bp, th):
        fixed = (2 * th * h_in * 2              # Wy blocks (bf16, double-buffered)
                 + 2 * w_in * w_out * 2         # Wxt blocks (bf16, double-buffered)
                 + th * w_out * 4)              # f32 H-pass tile (one plane at a time)
        per_plane = (2 * h_in * w_in * in_isize     # image blocks (native dtype, 2x)
                     + h_in * w_in * 2              # in-kernel bf16 image copy
                     + h_in * w_out * 4             # f32 W-pass result (pre-downcast)
                     + h_in * w_out * 2             # bf16 W-pass scratch
                     + 2 * th * w_out * out_isize)  # output blocks (2x)
        return fixed + bp * per_plane

    # H_out tile: full plane when small, else a multiple-of-8 tile that fits.
    t_hout = h_out if h_out <= _HOUT_TILE_CAP else _HOUT_TILE_CAP
    while t_hout > 8 and usage(1, t_hout) > budget:
        t_hout = max(8, (t_hout // 2) // 8 * 8)

    # Plane batch: largest divisor of P that fits, subject to grid-step policy.
    fixed = usage(0, t_hout)
    per_plane = usage(1, t_hout) - fixed
    cap_bp = max(1, int((budget - fixed) // max(per_plane, 1)))
    divisors = [d for d in range(1, p + 1) if p % d == 0]
    candidates = [d for d in divisors if d <= cap_bp] or [1]

    if n_cores <= 1 or p < 2:
        # Single TC: one maximal plane batch (best MXU fill, no per-step overhead).
        block_planes = max(candidates)
    else:
        n_h = -(-h_out // t_hout)
        steps = lambda d: p // d
        tiers = (
            [d for d in candidates
             if steps(d) >= 2 and steps(d) % 2 == 0 and steps(d) * n_h >= 4],
            [d for d in candidates if steps(d) >= 2 and steps(d) % 2 == 0],
            [d for d in candidates if steps(d) >= 2],
            candidates,
        )
        block_planes = next(max(t) for t in tiers if t)

    return block_planes, t_hout, vmem_limit


# ---------------------------------------------------------------------------
# Jitted implementation + wrapper.
# ---------------------------------------------------------------------------
@partial(jax.jit,
         static_argnames=("h_out", "w_out", "block_planes", "t_hout", "vmem_limit"))
def _scale_jitter_resize_impl(image, scale, *, h_out, w_out, block_planes,
                              t_hout, vmem_limit):
    n, c, h_in, w_in = image.shape
    p = n * c

    # bf16 interpolation weights (tiny). The image stays in its native dtype
    # and is cast inside the kernel.
    wy = _interp_matrix(h_out, h_in, scale).astype(jnp.bfloat16)      # (Hout, Hin)
    wxt = _interp_matrix(w_out, w_in, scale).T.astype(jnp.bfloat16)   # (Win, Wout)
    img_flat = image.reshape(p, h_in, w_in)                           # free reshape

    grid = (p // block_planes, pl.cdiv(h_out, t_hout))

    out = pl.pallas_call(
        _bilinear_kernel,
        out_shape=jax.ShapeDtypeStruct((p, h_out, w_out), image.dtype),
        grid_spec=pltpu.PrefetchScalarGridSpec(
            num_scalar_prefetch=0,
            grid=grid,
            in_specs=[
                # B planes per step (constant across the H_out axis -> no re-DMA).
                pl.BlockSpec((block_planes, h_in, w_in), lambda i, j: (i, 0, 0)),
                # H-pass weight tile for this H_out tile.
                pl.BlockSpec((t_hout, h_in), lambda i, j: (j, 0)),
                # Shared W-pass weights (constant block index; small).
                pl.BlockSpec((w_in, w_out), lambda i, j: (0, 0)),
            ],
            out_specs=pl.BlockSpec((block_planes, t_hout, w_out),
                                   lambda i, j: (i, j, 0)),
            scratch_shapes=[
                # bf16 W-pass result, reused across all H_out tiles of a batch.
                pltpu.VMEM((block_planes * h_in, w_out), jnp.bfloat16),
            ],
        ),
        compiler_params=pltpu.CompilerParams(
            dimension_semantics=("parallel", "arbitrary"),
            vmem_limit_bytes=vmem_limit,
        ),
    )(img_flat, wy, wxt)

    return out.reshape(n, c, h_out, w_out)


def scale_jitter_resize(image, scale):
    """Bilinear resize of an NCHW image by `scale` (host Python float)."""
    n, c, h_in, w_in = image.shape
    scale = float(scale)
    h_out = int(math.floor(h_in * scale))
    w_out = int(math.floor(w_in * scale))
    if h_out < 1 or w_out < 1:
        raise ValueError(f"scale {scale} produces empty output for {(h_in, w_in)}")

    isize = jnp.dtype(image.dtype).itemsize
    block_planes, t_hout, vmem_limit = _choose_tiles(
        n * c, h_in, w_in, h_out, w_out, isize, isize)
    # Only (shapes, h_out, w_out, tiles) key the jit cache; the scale itself is
    # dynamic, so calls landing on the same output size do not recompile.
    return _scale_jitter_resize_impl(
        image, jnp.float32(scale), h_out=h_out, w_out=w_out,
        block_planes=block_planes, t_hout=t_hout, vmem_limit=vmem_limit)


class ScaleJitter:
    """Scales an image by a random factor (JAX/Pallas port of the torch module).

    The random scale is drawn on host with numpy (matching the torch module's
    np.random.uniform) so no device sync is required; compiled kernels are
    cached per resulting output size.
    """

    def __init__(self, amount, seed=0):
        if not isinstance(amount, tuple):
            amount = (1.0 / amount, amount)
        self.amount = amount
        self._rng = np.random.default_rng(seed)
        self.last_scale = None

    def __call__(self, image):
        scale = float(self._rng.uniform(self.amount[0], self.amount[1]))
        self.last_scale = scale
        return scale_jitter_resize(image, scale)


if __name__ == "__main__":
    key = jax.random.PRNGKey(0)

    # NCHW, matching the PyTorch conv-input convention.
    image = jax.random.normal(key, (2, 4, 16, 16), dtype=jnp.float32)

    jitter = ScaleJitter(2.0, seed=0)   # scale drawn uniformly from (0.5, 2.0)
    out = jitter(image)
    out = jax.block_until_ready(out)

    n, c, h_in, w_in = image.shape
    h_out = int(math.floor(h_in * jitter.last_scale))
    w_out = int(math.floor(w_in * jitter.last_scale))

    assert out.shape == (n, c, h_out, w_out)
    assert out.dtype == image.dtype
    assert bool(jnp.all(jnp.isfinite(out)))

    # Pure-JAX reference with the same interpolation matrices (f32); the kernel
    # uses bf16 operands, so allow a loose tolerance.
    wy_ref = _interp_matrix(h_out, h_in, jnp.float32(jitter.last_scale))
    wxt_ref = _interp_matrix(w_out, w_in, jnp.float32(jitter.last_scale)).T
    ref = jnp.einsum('oh,bchw->bcow', wy_ref, image)
    ref = jnp.einsum('bcow,wx->bcox', ref, wxt_ref)
    assert bool(jnp.allclose(out, ref, atol=0.1, rtol=0.1))

    print("KERNEL_OK")
</pallas_src>

<mosaic_0001>
module attributes {stable_mosaic.version = 11 : i64} {
  func.func @_bilinear_kernel(%arg0: i32, %arg1: i32, %arg2: memref<8x16x16xf32, #tpu.memory_space<vmem>>, %arg3: memref<23x16xbf16, #tpu.memory_space<vmem>>, %arg4: memref<16x23xbf16, #tpu.memory_space<vmem>>, %arg5: memref<8x23x23xf32, #tpu.memory_space<vmem>>, %arg6: memref<128x23xbf16, #tpu.memory_space<vmem>>) attributes {dimension_semantics = [#tpu.dimension_semantics<parallel>, #tpu.dimension_semantics<arbitrary>], iteration_bounds = array<i64: 1, 1>, scalar_prefetch = 0 : i64, scratch_operands = 1 : i64, tpu.core_type = #tpu.core_type<tc>, window_params = [{transform_indices = @transform_0, window_bounds = array<i64: 8, 16, 16>}, {transform_indices = @transform_1, window_bounds = array<i64: 23, 16>}, {pipeline_mode = #tpu.pipeline_mode<synchronous>, transform_indices = @transform_2, window_bounds = array<i64: 16, 23>}, {transform_indices = @transform_3, window_bounds = array<i64: 8, 23, 23>}]} {
    %c0_i32 = arith.constant 0 : i32
    %0 = arith.cmpi eq, %arg1, %c0_i32 : i32
    %1 = arith.extui %0 : i1 to i32
    %c0_i32_0 = arith.constant 0 : i32
    %2 = arith.cmpi ne, %1, %c0_i32_0 : i32
    scf.if %2 {
      %c0_35 = arith.constant 0 : index
      %c0_36 = arith.constant 0 : index
      %c0_37 = arith.constant 0 : index
      %44 = vector.load %arg2[%c0_35, %c0_36, %c0_37] : memref<8x16x16xf32, #tpu.memory_space<vmem>>, vector<8x16x16xf32>
      %45 = vector.shape_cast %44 : vector<8x16x16xf32> to vector<128x16xf32>
      %46 = arith.truncf %45 : vector<128x16xf32> to vector<128x16xbf16>
      %c0_38 = arith.constant 0 : index
      %c0_39 = arith.constant 0 : index
      %47 = vector.load %arg4[%c0_38, %c0_39] : memref<16x23xbf16, #tpu.memory_space<vmem>>, vector<16x23xbf16>
      %cst_40 = arith.constant dense<0.000000e+00> : vector<128x23xf32>
      %48 = tpu.matmul %46, %47, %cst_40 {dimension_numbers = #tpu.dot_dimension_numbers<[1], [0], [0], [1], [0, 0, 1, 1], [], []>} : vector<128x16xbf16>, vector<16x23xbf16>, vector<128x23xf32> -> vector<128x23xf32>
      %49 = arith.truncf %48 : vector<128x23xf32> to vector<128x23xbf16>
      %c0_41 = arith.constant 0 : index
      %c0_42 = arith.constant 0 : index
      %50 = vector.load %arg6[%c0_41, %c0_42] : memref<128x23xbf16, #tpu.memory_space<vmem>>, vector<128x23xbf16>
      tpu.vector_store %arg6[%c0_41, %c0_42], %49 {strides = array<i32>} : memref<128x23xbf16, #tpu.memory_space<vmem>>, vector<128x23xbf16>,
    } else {
    }
    %c0 = arith.constant 0 : index
    %c0_1 = arith.constant 0 : index
    %3 = vector.load %arg3[%c0, %c0_1] : memref<23x16xbf16, #tpu.memory_space<vmem>>, vector<23x16xbf16>
    %c0_2 = arith.constant 0 : index
    %c0_3 = arith.constant 0 : index
    %4 = vector.load %arg6[%c0_2, %c0_3] : memref<128x23xbf16, #tpu.memory_space<vmem>>, vector<16x23xbf16>
    %cst = arith.constant dense<0.000000e+00> : vector<23x23xf32>
    %5 = tpu.matmul %3, %4, %cst {dimension_numbers = #tpu.dot_dimension_numbers<[1], [0], [0], [1], [0, 0, 1, 1], [], []>} : vector<23x16xbf16>, vector<16x23xbf16>, vector<23x23xf32> -> vector<23x23xf32>
    %c0_4 = arith.constant 0 : index
    %c0_5 = arith.constant 0 : index
    %c0_6 = arith.constant 0 : index
    %6 = vector.load %arg5[%c0_4, %c0_5, %c0_6] : memref<8x23x23xf32, #tpu.memory_space<vmem>>, vector<1x23x23xf32>
    %7 = vector.shape_cast %6 : vector<1x23x23xf32> to vector<23x23xf32>
    %8 = vector.shape_cast %5 : vector<23x23xf32> to vector<1x23x23xf32>
    tpu.vector_store %arg5[%c0_4, %c0_5, %c0_6], %8 {strides = array<i32>} : memref<8x23x23xf32, #tpu.memory_space<vmem>>, vector<1x23x23xf32>,
    %c16 = arith.constant 16 : index
    %c0_7 = arith.constant 0 : index
    %9 = vector.load %arg6[%c16, %c0_7] : memref<128x23xbf16, #tpu.memory_space<vmem>>, vector<16x23xbf16>
    %cst_8 = arith.constant dense<0.000000e+00> : vector<23x23xf32>
    %10 = tpu.matmul %3, %9, %cst_8 {dimension_numbers = #tpu.dot_dimension_numbers<[1], [0], [0], [1], [0, 0, 1, 1], [], []>} : vector<23x16xbf16>, vector<16x23xbf16>, vector<23x23xf32> -> vector<23x23xf32>
    %c1 = arith.constant 1 : index
    %c0_9 = arith.constant 0 : index
    %c0_10 = arith.constant 0 : index
    %11 = vector.load %arg5[%c1, %c0_9, %c0_10] : memref<8x23x23xf32, #tpu.memory_space<vmem>>, vector<1x23x23xf32>
    %12 = vector.shape_cast %11 : vector<1x23x23xf32> to vector<23x23xf32>
    %13 = vector.shape_cast %10 : vector<23x23xf32> to vector<1x23x23xf32>
    tpu.vector_store %arg5[%c1, %c0_9, %c0_10], %13 {strides = array<i32>} : memref<8x23x23xf32, #tpu.memory_space<vmem>>, vector<1x23x23xf32>,
    %c32 = arith.constant 32 : index
    %c0_11 = arith.constant 0 : index
    %14 = vector.load %arg6[%c32, %c0_11] : memref<128x23xbf16, #tpu.memory_space<vmem>>, vector<16x23xbf16>
    %cst_12 = arith.constant dense<0.000000e+00> : vector<23x23xf32>
    %15 = tpu.matmul %3, %14, %cst_12 {dimension_numbers = #tpu.dot_dimension_numbers<[1], [0], [0], [1], [0, 0, 1, 1], [], []>} : vector<23x16xbf16>, vector<16x23xbf16>, vector<23x23xf32> -> vector<23x23xf32>
    %c2 = arith.constant 2 : index
    %c0_13 = arith.constant 0 : index
    %c0_14 = arith.constant 0 : index
    %16 = vector.load %arg5[%c2, %c0_13, %c0_14] : memref<8x23x23xf32, #tpu.memory_space<vmem>>, vector<1x23x23xf32>
    %17 = vector.shape_cast %16 : vector<1x23x23xf32> to vector<23x23xf32>
    %18 = vector.shape_cast %15 : vector<23x23xf32> to vector<1x23x23xf32>
    tpu.vector_store %arg5[%c2, %c0_13, %c0_14], %18 {strides = array<i32>} : memref<8x23x23xf32, #tpu.memory_space<vmem>>, vector<1x23x23xf32>,
    %c48 = arith.constant 48 : index
    %c0_15 = arith.constant 0 : index
    %19 = vector.load %arg6[%c48, %c0_15] : memref<128x23xbf16, #tpu.memory_space<vmem>>, vector<16x23xbf16>
    %cst_16 = arith.constant dense<0.000000e+00> : vector<23x23xf32>
    %20 = tpu.matmul %3, %19, %cst_16 {dimension_numbers = #tpu.dot_dimension_numbers<[1], [0], [0], [1], [0, 0, 1, 1], [], []>} : vector<23x16xbf16>, vector<16x23xbf16>, vector<23x23xf32> -> vector<23x23xf32>
    %c3 = arith.constant 3 : index
    %c0_17 = arith.constant 0 : index
    %c0_18 = arith.constant 0 : index
    %21 = vector.load %arg5[%c3, %c0_17, %c0_18] : memref<8x23x23xf32, #tpu.memory_space<vmem>>, vector<1x23x23xf32>
    %22 = vector.shape_cast %21 : vector<1x23x23xf32> to vector<23x23xf32>
    %23 = vector.shape_cast %20 : vector<23x23xf32> to vector<1x23x23xf32>
    tpu.vector_store %arg5[%c3, %c0_17, %c0_18], %23 {strides = array<i32>} : memref<8x23x23xf32, #tpu.memory_space<vmem>>, vector<1x23x23xf32>,
    %c64 = arith.constant 64 : index
    %c0_19 = arith.constant 0 : index
    %24 = vector.load %arg6[%c64, %c0_19] : memref<128x23xbf16, #tpu.memory_space<vmem>>, vector<16x23xbf16>
    %cst_20 = arith.constant dense<0.000000e+00> : vector<23x23xf32>
    %25 = tpu.matmul %3, %24, %cst_20 {dimension_numbers = #tpu.dot_dimension_numbers<[1], [0], [0], [1], [0, 0, 1, 1], [], []>} : vector<23x16xbf16>, vector<16x23xbf16>, vector<23x23xf32> -> vector<23x23xf32>
    %c4 = arith.constant 4 : index
    %c0_21 = arith.constant 0 : index
    %c0_22 = arith.constant 0 : index
    %26 = vector.load %arg5[%c4, %c0_21, %c0_22] : memref<8x23x23xf32, #tpu.memory_space<vmem>>, vector<1x23x23xf32>
    %27 = vector.shape_cast %26 : vector<1x23x23xf32> to vector<23x23xf32>
    %28 = vector.shape_cast %25 : vector<23x23xf32> to vector<1x23x23xf32>
    tpu.vector_store %arg5[%c4, %c0_21, %c0_22], %28 {strides = array<i32>} : memref<8x23x23xf32, #tpu.memory_space<vmem>>, vector<1x23x23xf32>,
    %c80 = arith.constant 80 : index
    %c0_23 = arith.constant 0 : index
    %29 = vector.load %arg6[%c80, %c0_23] : memref<128x23xbf16, #tpu.memory_space<vmem>>, vector<16x23xbf16>
    %cst_24 = arith.constant dense<0.000000e+00> : vector<23x23xf32>
    %30 = tpu.matmul %3, %29, %cst_24 {dimension_numbers = #tpu.dot_dimension_numbers<[1], [0], [0], [1], [0, 0, 1, 1], [], []>} : vector<23x16xbf16>, vector<16x23xbf16>, vector<23x23xf32> -> vector<23x23xf32>
    %c5 = arith.constant 5 : index
    %c0_25 = arith.constant 0 : index
    %c0_26 = arith.constant 0 : index
    %31 = vector.load %arg5[%c5, %c0_25, %c0_26] : memref<8x23x23xf32, #tpu.memory_space<vmem>>, vector<1x23x23xf32>
    %32 = vector.shape_cast %31 : vector<1x23x23xf32> to vector<23x23xf32>
    %33 = vector.shape_cast %30 : vector<23x23xf32> to vector<1x23x23xf32>
    tpu.vector_store %arg5[%c5, %c0_25, %c0_26], %33 {strides = array<i32>} : memref<8x23x23xf32, #tpu.memory_space<vmem>>, vector<1x23x23xf32>,
    %c96 = arith.constant 96 : index
    %c0_27 = arith.constant 0 : index
    %34 = vector.load %arg6[%c96, %c0_27] : memref<128x23xbf16, #tpu.memory_space<vmem>>, vector<16x23xbf16>
    %cst_28 = arith.constant dense<0.000000e+00> : vector<23x23xf32>
    %35 = tpu.matmul %3, %34, %cst_28 {dimension_numbers = #tpu.dot_dimension_numbers<[1], [0], [0], [1], [0, 0, 1, 1], [], []>} : vector<23x16xbf16>, vector<16x23xbf16>, vector<23x23xf32> -> vector<23x23xf32>
    %c6 = arith.constant 6 : index
    %c0_29 = arith.constant 0 : index
    %c0_30 = arith.constant 0 : index
    %36 = vector.load %arg5[%c6, %c0_29, %c0_30] : memref<8x23x23xf32, #tpu.memory_space<vmem>>, vector<1x23x23xf32>
    %37 = vector.shape_cast %36 : vector<1x23x23xf32> to vector<23x23xf32>
    %38 = vector.shape_cast %35 : vector<23x23xf32> to vector<1x23x23xf32>
    tpu.vector_store %arg5[%c6, %c0_29, %c0_30], %38 {strides = array<i32>} : memref<8x23x23xf32, #tpu.memory_space<vmem>>, vector<1x23x23xf32>,
    %c112 = arith.constant 112 : index
    %c0_31 = arith.constant 0 : index
    %39 = vector.load %arg6[%c112, %c0_31] : memref<128x23xbf16, #tpu.memory_space<vmem>>, vector<16x23xbf16>
    %cst_32 = arith.constant dense<0.000000e+00> : vector<23x23xf32>
    %40 = tpu.matmul %3, %39, %cst_32 {dimension_numbers = #tpu.dot_dimension_numbers<[1], [0], [0], [1], [0, 0, 1, 1], [], []>} : vector<23x16xbf16>, vector<16x23xbf16>, vector<23x23xf32> -> vector<23x23xf32>
    %c7 = arith.constant 7 : index
    %c0_33 = arith.constant 0 : index
    %c0_34 = arith.constant 0 : index
    %41 = vector.load %arg5[%c7, %c0_33, %c0_34] : memref<8x23x23xf32, #tpu.memory_space<vmem>>, vector<1x23x23xf32>
    %42 = vector.shape_cast %41 : vector<1x23x23xf32> to vector<23x23xf32>
    %43 = vector.shape_cast %40 : vector<23x23xf32> to vector<1x23x23xf32>
    tpu.vector_store %arg5[%c7, %c0_33, %c0_34], %43 {strides = array<i32>} : memref<8x23x23xf32, #tpu.memory_space<vmem>>, vector<1x23x23xf32>,
    return
  }
  func.func @transform_0(%arg0: i32, %arg1: i32) -> (i32, i32, i32) {
    %c0_i32 = arith.constant 0 : i32
    %c0_i32_0 = arith.constant 0 : i32
    %c0_i32_1 = arith.constant 0 : i32
    return %arg0, %c0_i32, %c0_i32_0 : i32, i32, i32
  }
  func.func @transform_1(%arg0: i32, %arg1: i32) -> (i32, i32) {
    %c0_i32 = arith.constant 0 : i32
    %c0_i32_0 = arith.constant 0 : i32
    return %arg1, %c0_i32 : i32, i32
  }
  func.func @transform_2(%arg0: i32, %arg1: i32) -> (i32, i32) {
    %c0_i32 = arith.constant 0 : i32
    %c0_i32_0 = arith.constant 0 : i32
    %c0_i32_1 = arith.constant 0 : i32
    return %c0_i32, %c0_i32_0 : i32, i32
  }
  func.func @transform_3(%arg0: i32, %arg1: i32) -> (i32, i32, i32) {
    %c0_i32 = arith.constant 0 : i32
    %c0_i32_0 = arith.constant 0 : i32
    return %arg0, %arg1, %c0_i32 : i32, i32, i32
  }
}

</mosaic_0001>

<bundles_post_ra>
// kernel: _scale_jitter_resize_impl.1
= control target key start
LH: loop header
LB: loop body
LE: loop exit
PB: predicated region body
PF: predicated region fallthrough
CT: control target
= control target key end

     0   :  { %8 = vsyncpa [#allocation4], 0  ;;  %s1078_s0 = inlined_call_operand.hbm [shape: f32[8,16,16], index: 0, kind: input, shape index: {}]   ;;  %s1079_s1 = inlined_call_operand.hbm [shape: bf16[23,16], index: 1, kind: input, shape index: {}]   ;;  %s1080_s2 = inlined_call_operand.hbm [shape: bf16[16,23], index: 2, kind: input, shape index: {}]   ;;  %s1081_s3 = inlined_call_operand.hbm [shape: f32[8,23,23], index: 3, kind: output, shape index: {}]  }
   0x1   :  { %9 = vsyncpa [#allocation7], 0 }
   0x2   :  { %10 = vsyncpa [#allocation5], 0  ;;  %s924_s12 = smov [#allocation6]   ;;  %s830_s16 = scalar_lea.hbm %s1079_s1, 192 }
   0x3   :  { %s28_s13 = sshll.u32 %s924_s12, 4  ;;  %p831_p0 = scmp.ne.s32.totalorder %s1079_s1, %s830_s16  ;;  %s29_s13 = int_to_ptr.vmem [resolvable:$true] %s28_s13 }
   0x4   :  { %p834_p1 = scmp.lt.u32.totalorder %s830_s16, %s1079_s1 }
   0x6   :  { %p836_p2 = pnand %p834_p1, %p831_p0 }
   0x8   :  { %839 = shalt.err (!%p836_p2)
}
   0x9   :  { %s840_s21 = scalar_lea.vmem %s29_s13, 192  ;;  %p845_p4 = scmp.lt.s32.totalorder %s29_s13, %s29_s13 }
   0xa   :  { %p841_p3 = scmp.ne.s32.totalorder %s29_s13, %s840_s21  ;;  %p846_p5 = scmp.lt.s32.totalorder %s840_s21, %s840_s21 }
   0xc   :  { %p847_p6 = por %p846_p5, %p845_p4 }
   0xe   :  { %p848_p7 = pnand %p847_p6, %p841_p3 }
  0x10   :  { %851 = shalt.err (!%p848_p7)
}
  0x11   :  { %s925_s22 = smov 64   ;;  %s926_s23 = smov 4  }
  0x12   :  { %34 = dma.hbm_to_vmem [thread:$0]  %s1079_s1, 192, %s29_s13, [#allocation7], %s925_s22, %s925_s22, %s926_s23  }
  0x13   :  { %s927_s26 = smov [#allocation3]   ;;  %s852_s30 = scalar_lea.hbm %s1078_s0, 2048 }
  0x14   :  { %s16_s27 = sshll.u32 %s927_s26, 4  ;;  %p853_p8 = scmp.ne.s32.totalorder %s1078_s0, %s852_s30  ;;  %s17_s27 = int_to_ptr.vmem [resolvable:$true] %s16_s27 }
  0x15   :  { %p856_p9 = scmp.lt.u32.totalorder %s852_s30, %s1078_s0 }
  0x17   :  { %p858_p10 = pnand %p856_p9, %p853_p8 }
  0x19   :  { %861 = shalt.err (!%p858_p10)
}
  0x1a   :  { %s862_s8 = scalar_lea.vmem %s17_s27, 2048  ;;  %p867_p12 = scmp.lt.s32.totalorder %s17_s27, %s17_s27 }
  0x1b   :  { %p863_p11 = scmp.ne.s32.totalorder %s17_s27, %s862_s8  ;;  %p868_p13 = scmp.lt.s32.totalorder %s862_s8, %s862_s8 }
  0x1d   :  { %p869_p0 = por %p868_p13, %p867_p12 }
  0x1f   :  { %p870_p1 = pnand %p869_p0, %p863_p11 }
  0x21   :  { %873 = shalt.err (!%p870_p1)
}
  0x22   :  { %s928_s1 = smov 128   ;;  %s929_s9 = smov 8  }
  0x23   :  { %22 = dma.hbm_to_vmem [thread:$0]  %s1078_s0, 2048, %s17_s27, [#allocation4], %s928_s1, %s928_s1, %s929_s9  }
  0x24   :  { %s930_s12 = smov [#allocation8]   ;;  %s874_s16 = scalar_lea.hbm %s1080_s2, 128 }
  0x25   :  { %s40_s13 = sshll.u32 %s930_s12, 4  ;;  %p875_p2 = scmp.ne.s32.totalorder %s1080_s2, %s874_s16  ;;  %s41_s13 = int_to_ptr.vmem [resolvable:$true] %s40_s13 }
  0x26   :  { %p878_p3 = scmp.lt.u32.totalorder %s874_s16, %s1080_s2 }
  0x28   :  { %p880_p4 = pnand %p878_p3, %p875_p2 }
  0x2a   :  { %883 = shalt.err (!%p880_p4)
}
  0x2b   :  { %s884_s21 = scalar_lea.vmem %s41_s13, 128  ;;  %p889_p6 = scmp.lt.s32.totalorder %s41_s13, %s41_s13 }
  0x2c   :  { %p885_p5 = scmp.ne.s32.totalorder %s41_s13, %s884_s21  ;;  %p890_p7 = scmp.lt.s32.totalorder %s884_s21, %s884_s21 }
  0x2e   :  { %p891_p8 = por %p890_p7, %p889_p6 }
  0x30   :  { %p892_p9 = pnand %p891_p8, %p885_p5 }
  0x32   :  { %895 = shalt.err (!%p892_p9)
}
  0x33   :  { %46 = dma.hbm_to_vmem [thread:$0]  %s1080_s2, 128, %s41_s13, [#allocation7], %s925_s22, %s925_s22, %s926_s23  }
  0x34   :  { %918 = dma.done.wait [#allocation4], 2048  }
  0x35   :  { %919 = vsyncadd [#allocation4], 4294965248 }
  0x36   :  { %920 = dma.done.wait [#allocation7], 320  }
  0x37   :  { %921 = vsyncadd [#allocation7], 4294966976  ;;  %v827_v0 = vld [vmem:[#allocation8] sm:$0xff]   ;;  %v61_v1 = vld [vmem:[#allocation3] sm:$0xff]  ;;  %vm93_vm0 = vcmask 130048   ;;  %vm223_vm1 = vcmask 187392  }
  0x38   :  { %v62_v2 = vld [vmem:[#allocation3 + $0x8] sm:$0xff]  ;;  %v63_v3 = vld [vmem:[#allocation3 + $0x10] sm:$0xff]  ;;  %753 = vmatprep.subr.bf16.mxu0 %v827_v0  ;;  %v64_v5 = vld [vmem:[#allocation3 + $0x18] sm:$0xff]  ;;  %vm302_vm2 = vcmask 186368   ;;  %s931_s2 = smov [#allocation9]  }
  0x39   :  { %v77_v4 = vpack.c.bf16 %v62_v2, %v61_v1  ;;  %v65_v6 = vld [vmem:[#allocation3 + $0x20] sm:$0xff]  ;;  %v66_v7 = vld [vmem:[#allocation3 + $0x28] sm:$0xff]  ;;  %754 = vmatpush3.bf16.msra.mxu0 %v827_v0  ;;  %v78_v8 = vpack.c.bf16 %v64_v5, %v63_v3  ;;  %v67_v10 = vld [vmem:[#allocation3 + $0x30] sm:$0xff]  ;;  %s680_s22 = sshll.u32 %s931_s2, 4  ;;  %s681_s22 = int_to_ptr.vmem [resolvable:$true] %s680_s22 }
  0x3a   :  { %v79_v9 = vpack.c.bf16 %v66_v7, %v65_v6  ;;  %v68_v11 = vld [vmem:[#allocation3 + $0x38] sm:$0xff]  ;;  %v69_v12 = vld [vmem:[#allocation3 + $0x40] sm:$0xff]  ;;  %v70_v13 = vld [vmem:[#allocation3 + $0x48] sm:$0xff]  ;;  %s896_s23 = scalar_lea.vmem %s681_s22, 3072  ;;  %p901_p11 = scmp.lt.s32.totalorder %s681_s22, %s681_s22 }
  0x3b   :  { %755 = vmatprep.mubr.msk.bf16.mxu0 %vm93_vm0, %v77_v4  ;;  %v80_v14 = vpack.c.bf16 %v68_v11, %v67_v10  ;;  %v81_v15 = vpack.c.bf16 %v70_v13, %v69_v12  ;;  %v71_v16 = vld [vmem:[#allocation3 + $0x50] sm:$0xff]  ;;  %v72_v17 = vld [vmem:[#allocation3 + $0x58] sm:$0xff]  ;;  %v73_v18 = vld [vmem:[#allocation3 + $0x60] sm:$0xff]  ;;  %p897_p10 = scmp.ne.s32.totalorder %s681_s22, %s896_s23  ;;  %p902_p12 = scmp.lt.s32.totalorder %s896_s23, %s896_s23 }
  0x3c   :  { %756 = vmatmul.mubr.msk.bf16.vlgmr.msra.gmra.mrb[0].mxu0 %vm93_vm0, %v78_v8  ;;  %v74_v19 = vld [vmem:[#allocation3 + $0x68] sm:$0xff]  ;;  %v82_v20 = vpack.c.bf16 %v72_v17, %v71_v16  ;;  %v75_v22 = vld [vmem:[#allocation3 + $0x70] sm:$0xff]  ;;  %v76_v23 = vld [vmem:[#allocation3 + $0x78] sm:$0xff] }
  0x3d   :  { %759 = vmatprep.mubr.msk.bf16.mxu0 %vm93_vm0, %v79_v9  ;;  %v83_v21 = vpack.c.bf16 %v74_v19, %v73_v18  ;;  %v84_v24 = vpack.c.bf16 %v76_v23, %v75_v22  ;;  %v1005_v25 = vld [vmem:[#allocation6] sm:$0xff]   ;;  %v829_v39 = vld [vmem:[#allocation6 + $0x8] ss:$0 sps:$4 sm:$0xff]   ;;  %p903_p13 = por %p902_p12, %p901_p11 }
  0x3e   :  { %773 = vmatprep.mubr.msk.bf16.mxu1 %vm93_vm0, %v1005_v25 }
  0x3f   :  { %p904_p0 = pnand %p903_p13, %p897_p10 }
  0x44   :  { %760 = vmatmul.mubr.msk.bf16.gmra.mrb[4].mxu0 %vm93_vm0, %v80_v14 }
  0x45   :  { %763 = vmatprep.mubr.msk.bf16.mxu0 %vm93_vm0, %v81_v15 }
  0x4c   :  { %764 = vmatmul.mubr.msk.bf16.gmra.mrb[8].mxu0 %vm93_vm0, %v82_v20 }
  0x4d   :  { %767 = vmatprep.mubr.msk.bf16.mxu0 %vm93_vm0, %v83_v21 }
  0x54   :  { %768 = vmatmul.mubr.msk.bf16.gmra.mrb[12].mxu0 %vm93_vm0, %v84_v24 }
  0x55   :  { %797 = vmatprep.mubr.msk.bf16.mxu0 %vm93_vm0, %v1005_v25 }
 0x10f   :  { %v757_v26 = vpop.f32.mrb[0].mxu0 }
 0x110   :  { %v152_v27 = vpop.f32.mrb[1].mxu0 }
 0x111   :  { %v758_v28 = vpop.f32.mrb[2].mxu0 }
 0x112   :  { %v216_v29 = vpack.c.bf16 %v758_v28, %v757_v26  ;;  %v155_v30 = vpop.f32.mrb[3].mxu0 }
 0x113   :  { %v215_v31 = vpack.c.bf16 %v155_v30, %v152_v27 }
 0x114   :  { %225 = vst.msk [vmem:[#allocation2 + $0x8] sm:$0xff] %vm223_vm1, %v216_v29 }
 0x115   :  { %224 = vst.msk [vmem:[#allocation2] sm:$0xff] %vm223_vm1, %v215_v31 }
 0x117   :  { %v761_v32 = vpop.f32.mrb[4].mxu0 }
 0x118   :  { %v168_v33 = vpop.f32.mrb[5].mxu0 }
 0x119   :  { %v762_v34 = vpop.f32.mrb[6].mxu0 }
 0x11a   :  { %v218_v35 = vpack.c.bf16 %v762_v34, %v761_v32  ;;  %v171_v36 = vpop.f32.mrb[7].mxu0 }
 0x11b   :  { %v217_v37 = vpack.c.bf16 %v171_v36, %v168_v33  ;;  %v304_v40 = vld [vmem:[#allocation2 + $0x8] sm:$0xff] }
 0x11c   :  { %227 = vst.msk [vmem:[#allocation2 + $0x18] sm:$0xff] %vm223_vm1, %v218_v35  ;;  %v235_v38 = vld [vmem:[#allocation2] sm:$0xff] }
 0x11d   :  { %226 = vst.msk [vmem:[#allocation2 + $0x10] sm:$0xff] %vm223_vm1, %v217_v37  ;;  %771 = vmatprep.subr.bf16.mxu1 %v235_v38 }
 0x11e   :  { %772 = vmatpush3.bf16.msra.mxu1 %v235_v38 }
 0x11f   :  { %v765_v41 = vpop.f32.mrb[8].mxu0  ;;  %777 = vmatprep.subr.bf16.mxu1 %v304_v40 }
 0x120   :  { %v184_v42 = vpop.f32.mrb[9].mxu0 }
 0x121   :  { %v766_v43 = vpop.f32.mrb[10].mxu0  ;;  %774 = vmatmul.mubr.msk.bf16.vlgmr.msra.gmra.mrb[0].mxu1 %vm93_vm0, %v829_v39 }
 0x122   :  { %v220_v44 = vpack.c.bf16 %v766_v43, %v765_v41  ;;  %v187_v45 = vpop.f32.mrb[11].mxu0  ;;  %778 = vmatpush3.bf16.msra.mxu1 %v304_v40  ;;  %779 = vmatprep.mubr.msk.bf16.mxu1 %vm93_vm0, %v1005_v25 }
 0x123   :  { %v219_v46 = vpack.c.bf16 %v187_v45, %v184_v42  ;;  %v410_v49 = vld [vmem:[#allocation2 + $0x18] sm:$0xff] }
 0x124   :  { %229 = vst.msk [vmem:[#allocation2 + $0x28] sm:$0xff] %vm223_vm1, %v220_v44  ;;  %v357_v47 = vld [vmem:[#allocation2 + $0x10] sm:$0xff] }
 0x125   :  { %228 = vst.msk [vmem:[#allocation2 + $0x20] sm:$0xff] %vm223_vm1, %v219_v46  ;;  %783 = vmatprep.subr.bf16.mxu1 %v357_v47 }
 0x127   :  { %v769_v48 = vpop.f32.mrb[12].mxu0 }
 0x128   :  { %v200_v50 = vpop.f32.mrb[13].mxu0 }
 0x129   :  { %780 = vmatmul.mubr.msk.bf16.vlgmr.msra.gmra.mrb[4].mxu1 %vm93_vm0, %v829_v39  ;;  %v770_v51 = vpop.f32.mrb[14].mxu0 }
 0x12a   :  { %784 = vmatpush3.bf16.msra.mxu1 %v357_v47  ;;  %785 = vmatprep.mubr.msk.bf16.mxu1 %vm93_vm0, %v1005_v25  ;;  %v222_v52 = vpack.c.bf16 %v770_v51, %v769_v48  ;;  %v203_v53 = vpop.f32.mrb[15].mxu0 }
 0x12b   :  { %789 = vmatprep.subr.bf16.mxu1 %v410_v49  ;;  %v221_v54 = vpack.c.bf16 %v203_v53, %v200_v50  ;;  %v516_v56 = vld [vmem:[#allocation2 + $0x28] sm:$0xff] }
 0x12c   :  { %v463_v55 = vld [vmem:[#allocation2 + $0x20] sm:$0xff]  ;;  %231 = vst.msk [vmem:[#allocation2 + $0x38] sm:$0xff] %vm223_vm1, %v222_v52 }
 0x12d   :  { %795 = vmatprep.subr.bf16.mxu0 %v463_v55  ;;  %230 = vst.msk [vmem:[#allocation2 + $0x30] sm:$0xff] %vm223_vm1, %v221_v54 }
 0x12e   :  { %796 = vmatpush3.bf16.msra.mxu0 %v463_v55 }
 0x131   :  { %786 = vmatmul.mubr.msk.bf16.vlgmr.msra.gmra.mrb[8].mxu1 %vm93_vm0, %v829_v39  ;;  %798 = vmatmul.mubr.msk.bf16.vlgmr.msra.gmra.mrb[16].mxu0 %vm93_vm0, %v829_v39 }
 0x132   :  { %790 = vmatpush3.bf16.msra.mxu1 %v410_v49  ;;  %791 = vmatprep.mubr.msk.bf16.mxu1 %vm93_vm0, %v1005_v25 }
 0x133   :  { %801 = vmatprep.subr.bf16.mxu1 %v516_v56  ;;  %809 = vmatprep.mubr.msk.bf16.mxu0 %vm93_vm0, %v1005_v25  ;;  %v622_v58 = vld [vmem:[#allocation2 + $0x38] sm:$0xff] }
 0x134   :  { %v569_v57 = vld [vmem:[#allocation2 + $0x30] sm:$0xff] }
 0x135   :  { %807 = vmatprep.subr.bf16.mxu0 %v569_v57 }
 0x136   :  { %808 = vmatpush3.bf16.msra.mxu0 %v569_v57 }
 0x139   :  { %792 = vmatmul.mubr.msk.bf16.vlgmr.msra.gmra.mrb[12].mxu1 %vm93_vm0, %v829_v39  ;;  %810 = vmatmul.mubr.msk.bf16.vlgmr.msra.gmra.mrb[20].mxu0 %vm93_vm0, %v829_v39 }
 0x13a   :  { %802 = vmatpush3.bf16.msra.mxu1 %v516_v56  ;;  %803 = vmatprep.mubr.msk.bf16.mxu1 %vm93_vm0, %v1005_v25 }
 0x13b   :  { %813 = vmatprep.subr.bf16.mxu1 %v622_v58 }
 0x141   :  { %804 = vmatmul.mubr.msk.bf16.vlgmr.msra.gmra.mrb[16].mxu1 %vm93_vm0, %v829_v39 }
 0x142   :  { %814 = vmatpush3.bf16.msra.mxu1 %v622_v58  ;;  %815 = vmatprep.mubr.msk.bf16.mxu1 %vm93_vm0, %v1005_v25 }
 0x149   :  { %816 = vmatmul.mubr.msk.bf16.vlgmr.msra.gmra.mrb[20].mxu1 %vm93_vm0, %v829_v39 }
 0x1f4   :  { %v775_v59 = vpop.f32.mrb[0].mxu1 }
 0x1f5   :  { %303 = vst.msk [vmem:[#allocation9 + $0x10] sm:$0x7f] %vm302_vm2, %v775_v59  ;;  %v285_v60 = vpop.f32.mrb[1].mxu1 }
 0x1f6   :  { %300 = vst.msk [vmem:[#allocation9] sm:$0xff] %vm223_vm1, %v285_v60  ;;  %v776_v61 = vpop.f32.mrb[2].mxu1 }
 0x1f7   :  { %v288_v62 = vpop.f32.mrb[3].mxu1 }
 0x1f8   :  { %301 = vst.msk [vmem:[#allocation9 + $0x8] sm:$0xff] %vm223_vm1, %v288_v62 }
 0x1fc   :  { %v781_v63 = vpop.f32.mrb[4].mxu1 }
 0x1fd   :  { %356 = vst.msk [vmem:[#allocation9 + $0x28] sm:$0x7f] %vm302_vm2, %v781_v63  ;;  %v339_v0 = vpop.f32.mrb[5].mxu1 }
 0x1fe   :  { %354 = vst.msk [vmem:[#allocation9 + $0x18] sm:$0xff] %vm223_vm1, %v339_v0  ;;  %v782_v1 = vpop.f32.mrb[6].mxu1 }
 0x1ff   :  { %v342_v2 = vpop.f32.mrb[7].mxu1 }
 0x200   :  { %355 = vst.msk [vmem:[#allocation9 + $0x20] sm:$0xff] %vm223_vm1, %v342_v2 }
 0x204   :  { %v787_v3 = vpop.f32.mrb[8].mxu1  ;;  %v799_v4 = vpop.f32.mrb[16].mxu0 }
 0x205   :  { %409 = vst.msk [vmem:[#allocation9 + $0x40] sm:$0x7f] %vm302_vm2, %v787_v3  ;;  %v392_v5 = vpop.f32.mrb[9].mxu1  ;;  %515 = vst.msk [vmem:[#allocation9 + $0x70] sm:$0x7f] %vm302_vm2, %v799_v4  ;;  %v498_v6 = vpop.f32.mrb[17].mxu0 }
 0x206   :  { %407 = vst.msk [vmem:[#allocation9 + $0x30] sm:$0xff] %vm223_vm1, %v392_v5  ;;  %v788_v7 = vpop.f32.mrb[10].mxu1  ;;  %513 = vst.msk [vmem:[#allocation9 + $0x60] sm:$0xff] %vm223_vm1, %v498_v6  ;;  %v800_v8 = vpop.f32.mrb[18].mxu0 }
 0x207   :  { %v395_v9 = vpop.f32.mrb[11].mxu1  ;;  %v501_v10 = vpop.f32.mrb[19].mxu0 }
 0x208   :  { %408 = vst.msk [vmem:[#allocation9 + $0x38] sm:$0xff] %vm223_vm1, %v395_v9  ;;  %514 = vst.msk [vmem:[#allocation9 + $0x68] sm:$0xff] %vm223_vm1, %v501_v10 }
 0x20c   :  { %v793_v11 = vpop.f32.mrb[12].mxu1  ;;  %v811_v12 = vpop.f32.mrb[20].mxu0 }
 0x20d   :  { %462 = vst.msk [vmem:[#allocation9 + $0x58] sm:$0x7f] %vm302_vm2, %v793_v11  ;;  %v445_v13 = vpop.f32.mrb[13].mxu1  ;;  %621 = vst.msk [vmem:[#allocation9 + $0xa0] sm:$0x7f] %vm302_vm2, %v811_v12  ;;  %v604_v14 = vpop.f32.mrb[21].mxu0 }
 0x20e   :  { %460 = vst.msk [vmem:[#allocation9 + $0x48] sm:$0xff] %vm223_vm1, %v445_v13  ;;  %v794_v15 = vpop.f32.mrb[14].mxu1  ;;  %619 = vst.msk [vmem:[#allocation9 + $0x90] sm:$0xff] %vm223_vm1, %v604_v14  ;;  %v812_v16 = vpop.f32.mrb[22].mxu0 }
 0x20f   :  { %v448_v17 = vpop.f32.mrb[15].mxu1  ;;  %v607_v18 = vpop.f32.mrb[23].mxu0 }
 0x210   :  { %461 = vst.msk [vmem:[#allocation9 + $0x50] sm:$0xff] %vm223_vm1, %v448_v17  ;;  %620 = vst.msk [vmem:[#allocation9 + $0x98] sm:$0xff] %vm223_vm1, %v607_v18 }
 0x214   :  { %v805_v19 = vpop.f32.mrb[16].mxu1 }
 0x215   :  { %568 = vst.msk [vmem:[#allocation9 + $0x88] sm:$0x7f] %vm302_vm2, %v805_v19  ;;  %v551_v20 = vpop.f32.mrb[17].mxu1 }
 0x216   :  { %566 = vst.msk [vmem:[#allocation9 + $0x78] sm:$0xff] %vm223_vm1, %v551_v20  ;;  %v806_v21 = vpop.f32.mrb[18].mxu1 }
 0x217   :  { %v554_v22 = vpop.f32.mrb[19].mxu1 }
 0x218   :  { %567 = vst.msk [vmem:[#allocation9 + $0x80] sm:$0xff] %vm223_vm1, %v554_v22 }
 0x21c   :  { %v817_v23 = vpop.f32.mrb[20].mxu1 }
 0x21d   :  { %674 = vst.msk [vmem:[#allocation9 + $0xb8] sm:$0x7f] %vm302_vm2, %v817_v23  ;;  %v657_v24 = vpop.f32.mrb[21].mxu1 }
 0x21e   :  { %672 = vst.msk [vmem:[#allocation9 + $0xa8] sm:$0xff] %vm223_vm1, %v657_v24  ;;  %v818_v25 = vpop.f32.mrb[22].mxu1 }
 0x21f   :  { %v660_v26 = vpop.f32.mrb[23].mxu1 }
 0x220   :  { %673 = vst.msk [vmem:[#allocation9 + $0xb0] sm:$0xff] %vm223_vm1, %v660_v26 }
 0x221   :  { %907 = shalt.err (!%p904_p0)
}
 0x222   :  { %s908_s27 = scalar_lea.hbm %s1081_s3, 3072 }
 0x223   :  { %p909_p1 = scmp.ne.s32.totalorder %s1081_s3, %s908_s27  ;;  %p912_p2 = scmp.lt.u32.totalorder %s908_s27, %s1081_s3 }
 0x225   :  { %p914_p3 = pnand %p912_p2, %p909_p1 }
 0x227   :  { %917 = shalt.err (!%p914_p3)
}
 0x228   :  { %686 = dma.vmem_to_hbm [thread:$0]  %s681_s22, 3072, %s1081_s3, [#allocation5], %s928_s1, %s928_s1, %s929_s9  }
 0x229   :  { %922 = dma.done.wait [#allocation5], 3072  }
 0x22a   :  { %923 = vsyncadd [#allocation5], 4294964224 }
 0x22b   :  { %690 = vsyncpa [#allocation4], 1 }
 0x22c   :  { %691 = vsyncpa [#allocation7], 1 }
 0x22d   :  { %692 = vsyncpa [#allocation5], 1 }

</bundles_post_ra>
